<compile_context>
chip_gen: v6e
topology: v6e:2x2x1
jax: 0.10.0
libtpu: 0.0.40
codegen_flags: <defaults>
</compile_context>

<pallas_src>
import jax
import jax.numpy as jnp
import numpy as np
from jax.experimental import pallas as pl
from jax.experimental.pallas import tpu as pltpu


_HIGHEST = jax.lax.Precision.HIGHEST


def _make_mlp_kernel(num_layers):
    """Fused concat + MLP + predict + ReLU kernel (feature-major, batch on lanes).

    Ref order:
      refs[0]   : (1+A, TB)  gathered [item_bias | item_attributes] rows, transposed
      refs[1]   : (U,   TB)  users_context^T
      refs[2:-1]: weights/biases (constant blocks, VMEM resident) in the order
                  [W0_item, W0_uc, b0, W1, b1, ..., W_{L-1}, b_{L-1}, wp, bp]
      refs[-1]  : (1, TB)    output scores (lane-dense)
    """

    def kernel(*refs):
        item_ref, uc_ref = refs[0], refs[1]
        w_refs = refs[2:-1]
        out_ref = refs[-1]

        # Layer 0: W0 @ concat([bias, uc, attr]) == W0_item @ [bias;attr] + W0_uc @ uc + b0
        w0i, w0u, b0 = w_refs[0], w_refs[1], w_refs[2]
        h = (jnp.dot(w0i[...], item_ref[...],
                     preferred_element_type=jnp.float32, precision=_HIGHEST)
             + jnp.dot(w0u[...], uc_ref[...],
                       preferred_element_type=jnp.float32, precision=_HIGHEST)
             + b0[...])
        h = jnp.maximum(h, 0.0)

        idx = 3
        for _ in range(num_layers - 1):
            w, b = w_refs[idx], w_refs[idx + 1]
            idx += 2
            h = jnp.maximum(
                jnp.dot(w[...], h, preferred_element_type=jnp.float32,
                        precision=_HIGHEST) + b[...], 0.0)

        # predict_layer (las -> 1) as broadcast-mul + sublane reduce (las is tiny),
        # producing a lane-dense (1, TB) row written straight to the output block.
        wp, bp = w_refs[idx], w_refs[idx + 1]              # (las, 1), (1, 1)
        s = jnp.sum(wp[...] * h, axis=0, keepdims=True) + bp[...]
        out_ref[...] = jnp.maximum(s, 0.0)                 # final ReLU

    return kernel


def contextual_popularity_forward(params, users_context, items_id, *, batch_tile=256):
    """JAX/Pallas equivalent of ContextualPopularityNet.forward (inference, dropout=0)."""
    users_context = users_context.astype(jnp.float32)
    B, U = users_context.shape
    A = params["attr_table"].shape[1]
    num_layers = len(params["mlp"])

    # Embedding / attribute row gathers stay in XLA (single fused gather+concat+transpose pass).
    item_feats = jnp.concatenate(
        [params["bias_table"][items_id], params["attr_table"][items_id]], axis=1)  # (B, 1+A)

    # Batch tile: multiple of 128, clamped to the padded batch so small B uses one grid step.
    B128 = -(-B // 128) * 128
    TB = min(-(-max(128, batch_tile) // 128) * 128, B128)
    n_blocks = -(-B // TB)
    Bp = n_blocks * TB
    pad = Bp - B

    def to_lane_major(x):                            # (B, F) -> (F, Bp), batch on lanes
        return jnp.pad(x.T, ((0, 0), (0, pad)))

    item_t = to_lane_major(item_feats)               # (1+A, Bp)
    uc_t = to_lane_major(users_context)              # (U,   Bp)

    # Split W0 column-wise so the torch.cat is fused into the first Linear.
    # Concat order was [bias | users_context | attrs]; regroup into [bias,attrs] and [uc].
    W0, b0 = params["mlp"][0]
    W0_item = jnp.concatenate([W0[:, :1], W0[:, 1 + U:]], axis=1)   # (H0, 1+A)
    W0_uc = W0[:, 1:1 + U]                                          # (H0, U)
    weight_args = [W0_item, W0_uc, b0.reshape(-1, 1)]
    for W, b in params["mlp"][1:]:
        weight_args += [W, b.reshape(-1, 1)]
    weight_args += [params["wp"].reshape(-1, 1), params["bp"].reshape(1, 1)]

    data_specs = [
        pl.BlockSpec((1 + A, TB), lambda i: (0, i)),
        pl.BlockSpec((U, TB), lambda i: (0, i)),
    ]
    # Full-array blocks with constant index maps -> weights stay resident in VMEM.
    weight_specs = [pl.BlockSpec(w.shape, lambda i: (0, 0)) for w in weight_args]

    n_param_elems = sum(int(np.prod(w.shape)) for w in weight_args)
    flops = 2 * Bp * sum(int(W.shape[0]) * int(W.shape[1]) for W, _ in params["mlp"])
    flops += 2 * Bp * int(params["wp"].size)
    cost = pl.CostEstimate(
        flops=int(flops),
        transcendentals=0,
        bytes_accessed=int(4 * (Bp * (1 + U + A) + Bp + n_param_elems)),
    )

    out = pl.pallas_call(
        _make_mlp_kernel(num_layers),
        out_shape=jax.ShapeDtypeStruct((1, Bp), jnp.float32),
        grid=(n_blocks,),
        in_specs=data_specs + weight_specs,
        out_specs=pl.BlockSpec((1, TB), lambda i: (0, i)),
        compiler_params=pltpu.CompilerParams(dimension_semantics=("parallel",)),
        cost_estimate=cost,
    )(item_t, uc_t, *weight_args)

    return out[0, :B]       # .flatten() of the PyTorch module -> (B,)


def init_params(key, num_items, item_context_size, num_user_cols, num_layers=4):
    """Parameters mirroring ContextualPopularityNet.__init__ (weights in PyTorch layout)."""
    A, U = item_context_size, num_user_cols
    factor_num = U + A + 1
    keys = jax.random.split(key, 2 * num_layers + 3)

    attr_table = jax.random.normal(keys[0], (num_items, A), jnp.float32)
    bias_table = jnp.zeros((num_items, 1), jnp.float32)        # ZeroEmbedding(padding_idx=0)

    mlp = []
    ki = 1
    fan_out = factor_num
    for i in range(num_layers):
        fan_in = factor_num // (2 ** i)
        fan_out = fan_in // 2
        bound = 1.0 / np.sqrt(fan_in)
        W = jax.random.uniform(keys[ki], (fan_out, fan_in), jnp.float32, -bound, bound)
        b = jax.random.uniform(keys[ki + 1], (fan_out,), jnp.float32, -bound, bound)
        ki += 2
        mlp.append((W, b))

    las = fan_out                                              # == factor_num // 2**num_layers
    bound = 1.0 / np.sqrt(las)
    wp = jax.random.uniform(keys[ki], (1, las), jnp.float32, -bound, bound)
    bp = jax.random.uniform(keys[ki + 1], (1,), jnp.float32, -bound, bound)
    return dict(attr_table=attr_table, bias_table=bias_table, mlp=mlp, wp=wp, bp=bp)


def reference_forward(params, users_context, items_id):
    """Pure-JAX literal translation of the PyTorch forward (for verification)."""
    users_context = users_context.astype(jnp.float32)
    t = jnp.concatenate(
        [params["bias_table"][items_id], users_context, params["attr_table"][items_id]],
        axis=1)
    h = t
    for W, b in params["mlp"]:
        h = jnp.maximum(jnp.dot(h, W.T, precision=_HIGHEST) + b, 0.0)
    s = jnp.dot(h, params["wp"].T, precision=_HIGHEST) + params["bp"]
    return jnp.maximum(s, 0.0).reshape(-1)


if __name__ == "__main__":
    num_items = 50
    item_context_size = 18        # len(items_attributes.columns)
    num_user_cols = 13            # len(users_columns)   -> factor_num = 13 + 18 + 1 = 32
    num_layers = 4
    B = 200                       # batch of (user context, item id) rows

    key = jax.random.PRNGKey(0)
    k_params, k_uc, k_ids = jax.random.split(key, 3)
    params = init_params(k_params, num_items, item_context_size, num_user_cols, num_layers)
    users_context = jax.random.normal(k_uc, (B, num_user_cols), jnp.float32)
    items_id = jax.random.randint(k_ids, (B,), 0, num_items, dtype=jnp.int32)

    fwd = jax.jit(contextual_popularity_forward)
    out = jax.block_until_ready(fwd(params, users_context, items_id))

    ref = jax.block_until_ready(reference_forward(params, users_context, items_id))
    assert out.shape == (B,)
    np.testing.assert_allclose(np.asarray(out), np.asarray(ref), rtol=1e-4, atol=1e-5)
    print("KERNEL_OK")
</pallas_src>

<mosaic_0001>
module attributes {stable_mosaic.version = 11 : i64} {
  func.func @kernel(%arg0: i32, %arg1: memref<19x256xf32, #tpu.memory_space<vmem>>, %arg2: memref<13x256xf32, #tpu.memory_space<vmem>>, %arg3: memref<16x19xf32, #tpu.memory_space<vmem>>, %arg4: memref<16x13xf32, #tpu.memory_space<vmem>>, %arg5: memref<16x1xf32, #tpu.memory_space<vmem>>, %arg6: memref<8x16xf32, #tpu.memory_space<vmem>>, %arg7: memref<8x1xf32, #tpu.memory_space<vmem>>, %arg8: memref<4x8xf32, #tpu.memory_space<vmem>>, %arg9: memref<4x1xf32, #tpu.memory_space<vmem>>, %arg10: memref<2x4xf32, #tpu.memory_space<vmem>>, %arg11: memref<2x1xf32, #tpu.memory_space<vmem>>, %arg12: memref<2x1xf32, #tpu.memory_space<vmem>>, %arg13: memref<1x1xf32, #tpu.memory_space<vmem>>, %arg14: memref<1x256xf32, #tpu.memory_space<vmem>>) attributes {dimension_semantics = [#tpu.dimension_semantics<parallel>], iteration_bounds = array<i64: 1>, scalar_prefetch = 0 : i64, scratch_operands = 0 : i64, tpu.core_type = #tpu.core_type<tc>, window_params = [{transform_indices = @transform_0, window_bounds = array<i64: 19, 256>}, {transform_indices = @transform_1, window_bounds = array<i64: 13, 256>}, {pipeline_mode = #tpu.pipeline_mode<synchronous>, transform_indices = @transform_2, window_bounds = array<i64: 16, 19>}, {pipeline_mode = #tpu.pipeline_mode<synchronous>, transform_indices = @transform_3, window_bounds = array<i64: 16, 13>}, {pipeline_mode = #tpu.pipeline_mode<synchronous>, transform_indices = @transform_4, window_bounds = array<i64: 16, 1>}, {pipeline_mode = #tpu.pipeline_mode<synchronous>, transform_indices = @transform_5, window_bounds = array<i64: 8, 16>}, {pipeline_mode = #tpu.pipeline_mode<synchronous>, transform_indices = @transform_6, window_bounds = array<i64: 8, 1>}, {pipeline_mode = #tpu.pipeline_mode<synchronous>, transform_indices = @transform_7, window_bounds = array<i64: 4, 8>}, {pipeline_mode = #tpu.pipeline_mode<synchronous>, transform_indices = @transform_8, window_bounds = array<i64: 4, 1>}, {pipeline_mode = #tpu.pipeline_mode<synchronous>, transform_indices = @transform_9, window_bounds = array<i64: 2, 4>}, {pipeline_mode = #tpu.pipeline_mode<synchronous>, transform_indices = @transform_10, window_bounds = array<i64: 2, 1>}, {pipeline_mode = #tpu.pipeline_mode<synchronous>, transform_indices = @transform_11, window_bounds = array<i64: 2, 1>}, {pipeline_mode = #tpu.pipeline_mode<synchronous>, transform_indices = @transform_12, window_bounds = array<i64: 1, 1>}, {transform_indices = @transform_13, window_bounds = array<i64: 1, 256>}]} {
    %c0 = arith.constant 0 : index
    %c0_0 = arith.constant 0 : index
    %0 = vector.load %arg3[%c0, %c0_0] : memref<16x19xf32, #tpu.memory_space<vmem>>, vector<16x19xf32>
    %c0_1 = arith.constant 0 : index
    %c0_2 = arith.constant 0 : index
    %1 = vector.load %arg1[%c0_1, %c0_2] : memref<19x256xf32, #tpu.memory_space<vmem>>, vector<19x256xf32>
    %cst = arith.constant dense<0.000000e+00> : vector<16x256xf32>
    %2 = tpu.matmul %0, %1, %cst {dimension_numbers = #tpu.dot_dimension_numbers<[1], [0], [0], [1], [0, 0, 1, 1], [], []>, precision = #tpu.contract_precision<fp32>} : vector<16x19xf32>, vector<19x256xf32>, vector<16x256xf32> -> vector<16x256xf32>
    %c0_3 = arith.constant 0 : index
    %c0_4 = arith.constant 0 : index
    %3 = vector.load %arg4[%c0_3, %c0_4] : memref<16x13xf32, #tpu.memory_space<vmem>>, vector<16x13xf32>
    %c0_5 = arith.constant 0 : index
    %c0_6 = arith.constant 0 : index
    %4 = vector.load %arg2[%c0_5, %c0_6] : memref<13x256xf32, #tpu.memory_space<vmem>>, vector<13x256xf32>
    %cst_7 = arith.constant dense<0.000000e+00> : vector<16x256xf32>
    %5 = tpu.matmul %3, %4, %cst_7 {dimension_numbers = #tpu.dot_dimension_numbers<[1], [0], [0], [1], [0, 0, 1, 1], [], []>, precision = #tpu.contract_precision<fp32>} : vector<16x13xf32>, vector<13x256xf32>, vector<16x256xf32> -> vector<16x256xf32>
    %6 = arith.addf %2, %5 : vector<16x256xf32>
    %c0_8 = arith.constant 0 : index
    %c0_9 = arith.constant 0 : index
    %7 = vector.load %arg5[%c0_8, %c0_9] : memref<16x1xf32, #tpu.memory_space<vmem>>, vector<16x1xf32>
    %8 = vector.broadcast %7 : vector<16x1xf32> to vector<16x256xf32>
    %9 = arith.addf %6, %8 : vector<16x256xf32>
    %cst_10 = arith.constant 0.000000e+00 : f32
    %10 = vector.broadcast %cst_10 : f32 to vector<16x256xf32>
    %11 = arith.maximumf %9, %10 : vector<16x256xf32>
    %c0_11 = arith.constant 0 : index
    %c0_12 = arith.constant 0 : index
    %12 = vector.load %arg6[%c0_11, %c0_12] : memref<8x16xf32, #tpu.memory_space<vmem>>, vector<8x16xf32>
    %cst_13 = arith.constant dense<0.000000e+00> : vector<8x256xf32>
    %13 = tpu.matmul %12, %11, %cst_13 {dimension_numbers = #tpu.dot_dimension_numbers<[1], [0], [0], [1], [0, 0, 1, 1], [], []>, precision = #tpu.contract_precision<fp32>} : vector<8x16xf32>, vector<16x256xf32>, vector<8x256xf32> -> vector<8x256xf32>
    %c0_14 = arith.constant 0 : index
    %c0_15 = arith.constant 0 : index
    %14 = vector.load %arg7[%c0_14, %c0_15] : memref<8x1xf32, #tpu.memory_space<vmem>>, vector<8x1xf32>
    %15 = vector.broadcast %14 : vector<8x1xf32> to vector<8x256xf32>
    %16 = arith.addf %13, %15 : vector<8x256xf32>
    %cst_16 = arith.constant 0.000000e+00 : f32
    %17 = vector.broadcast %cst_16 : f32 to vector<8x256xf32>
    %18 = arith.maximumf %16, %17 : vector<8x256xf32>
    %c0_17 = arith.constant 0 : index
    %c0_18 = arith.constant 0 : index
    %19 = vector.load %arg8[%c0_17, %c0_18] : memref<4x8xf32, #tpu.memory_space<vmem>>, vector<4x8xf32>
    %cst_19 = arith.constant dense<0.000000e+00> : vector<4x256xf32>
    %20 = tpu.matmul %19, %18, %cst_19 {dimension_numbers = #tpu.dot_dimension_numbers<[1], [0], [0], [1], [0, 0, 1, 1], [], []>, precision = #tpu.contract_precision<fp32>} : vector<4x8xf32>, vector<8x256xf32>, vector<4x256xf32> -> vector<4x256xf32>
    %c0_20 = arith.constant 0 : index
    %c0_21 = arith.constant 0 : index
    %21 = vector.load %arg9[%c0_20, %c0_21] : memref<4x1xf32, #tpu.memory_space<vmem>>, vector<4x1xf32>
    %22 = vector.broadcast %21 : vector<4x1xf32> to vector<4x256xf32>
    %23 = arith.addf %20, %22 : vector<4x256xf32>
    %cst_22 = arith.constant 0.000000e+00 : f32
    %24 = vector.broadcast %cst_22 : f32 to vector<4x256xf32>
    %25 = arith.maximumf %23, %24 : vector<4x256xf32>
    %c0_23 = arith.constant 0 : index
    %c0_24 = arith.constant 0 : index
    %26 = vector.load %arg10[%c0_23, %c0_24] : memref<2x4xf32, #tpu.memory_space<vmem>>, vector<2x4xf32>
    %cst_25 = arith.constant dense<0.000000e+00> : vector<2x256xf32>
    %27 = tpu.matmul %26, %25, %cst_25 {dimension_numbers = #tpu.dot_dimension_numbers<[1], [0], [0], [1], [0, 0, 1, 1], [], []>, precision = #tpu.contract_precision<fp32>} : vector<2x4xf32>, vector<4x256xf32>, vector<2x256xf32> -> vector<2x256xf32>
    %c0_26 = arith.constant 0 : index
    %c0_27 = arith.constant 0 : index
    %28 = vector.load %arg11[%c0_26, %c0_27] : memref<2x1xf32, #tpu.memory_space<vmem>>, vector<2x1xf32>
    %29 = vector.broadcast %28 : vector<2x1xf32> to vector<2x256xf32>
    %30 = arith.addf %27, %29 : vector<2x256xf32>
    %cst_28 = arith.constant 0.000000e+00 : f32
    %31 = vector.broadcast %cst_28 : f32 to vector<2x256xf32>
    %32 = arith.maximumf %30, %31 : vector<2x256xf32>
    %c0_29 = arith.constant 0 : index
    %c0_30 = arith.constant 0 : index
    %33 = vector.load %arg12[%c0_29, %c0_30] : memref<2x1xf32, #tpu.memory_space<vmem>>, vector<2x1xf32>
    %34 = vector.broadcast %33 : vector<2x1xf32> to vector<2x256xf32>
    %35 = arith.mulf %34, %32 : vector<2x256xf32>
    %cst_31 = arith.constant dense<0.000000e+00> : vector<256xf32>
    %36 = vector.multi_reduction <add>, %35, %cst_31 [0] : vector<2x256xf32> to vector<256xf32>
    %37 = vector.shape_cast %36 : vector<256xf32> to vector<1x256xf32>
    %c0_32 = arith.constant 0 : index
    %c0_33 = arith.constant 0 : index
    %38 = vector.load %arg13[%c0_32, %c0_33] : memref<1x1xf32, #tpu.memory_space<vmem>>, vector<1x1xf32>
    %39 = vector.broadcast %38 : vector<1x1xf32> to vector<1x256xf32>
    %40 = arith.addf %37, %39 : vector<1x256xf32>
    %cst_34 = arith.constant 0.000000e+00 : f32
    %41 = vector.broadcast %cst_34 : f32 to vector<1x256xf32>
    %42 = arith.maximumf %40, %41 : vector<1x256xf32>
    %c0_35 = arith.constant 0 : index
    %c0_36 = arith.constant 0 : index
    %43 = vector.load %arg14[%c0_35, %c0_36] : memref<1x256xf32, #tpu.memory_space<vmem>>, vector<1x256xf32>
    tpu.vector_store %arg14[%c0_35, %c0_36], %42 {strides = array<i32>} : memref<1x256xf32, #tpu.memory_space<vmem>>, vector<1x256xf32>,
    return
  }
  func.func @transform_0(%arg0: i32) -> (i32, i32) {
    %c0_i32 = arith.constant 0 : i32
    %c0_i32_0 = arith.constant 0 : i32
    return %c0_i32, %arg0 : i32, i32
  }
  func.func @transform_1(%arg0: i32) -> (i32, i32) {
    %c0_i32 = arith.constant 0 : i32
    %c0_i32_0 = arith.constant 0 : i32
    return %c0_i32, %arg0 : i32, i32
  }
  func.func @transform_2(%arg0: i32) -> (i32, i32) {
    %c0_i32 = arith.constant 0 : i32
    %c0_i32_0 = arith.constant 0 : i32
    %c0_i32_1 = arith.constant 0 : i32
    return %c0_i32, %c0_i32_0 : i32, i32
  }
  func.func @transform_3(%arg0: i32) -> (i32, i32) {
    %c0_i32 = arith.constant 0 : i32
    %c0_i32_0 = arith.constant 0 : i32
    %c0_i32_1 = arith.constant 0 : i32
    return %c0_i32, %c0_i32_0 : i32, i32
  }
  func.func @transform_4(%arg0: i32) -> (i32, i32) {
    %c0_i32 = arith.constant 0 : i32
    %c0_i32_0 = arith.constant 0 : i32
    %c0_i32_1 = arith.constant 0 : i32
    return %c0_i32, %c0_i32_0 : i32, i32
  }
  func.func @transform_5(%arg0: i32) -> (i32, i32) {
    %c0_i32 = arith.constant 0 : i32
    %c0_i32_0 = arith.constant 0 : i32
    %c0_i32_1 = arith.constant 0 : i32
    return %c0_i32, %c0_i32_0 : i32, i32
  }
  func.func @transform_6(%arg0: i32) -> (i32, i32) {
    %c0_i32 = arith.constant 0 : i32
    %c0_i32_0 = arith.constant 0 : i32
    %c0_i32_1 = arith.constant 0 : i32
    return %c0_i32, %c0_i32_0 : i32, i32
  }
  func.func @transform_7(%arg0: i32) -> (i32, i32) {
    %c0_i32 = arith.constant 0 : i32
    %c0_i32_0 = arith.constant 0 : i32
    %c0_i32_1 = arith.constant 0 : i32
    return %c0_i32, %c0_i32_0 : i32, i32
  }
  func.func @transform_8(%arg0: i32) -> (i32, i32) {
    %c0_i32 = arith.constant 0 : i32
    %c0_i32_0 = arith.constant 0 : i32
    %c0_i32_1 = arith.constant 0 : i32
    return %c0_i32, %c0_i32_0 : i32, i32
  }
  func.func @transform_9(%arg0: i32) -> (i32, i32) {
    %c0_i32 = arith.constant 0 : i32
    %c0_i32_0 = arith.constant 0 : i32
    %c0_i32_1 = arith.constant 0 : i32
    return %c0_i32, %c0_i32_0 : i32, i32
  }
  func.func @transform_10(%arg0: i32) -> (i32, i32) {
    %c0_i32 = arith.constant 0 : i32
    %c0_i32_0 = arith.constant 0 : i32
    %c0_i32_1 = arith.constant 0 : i32
    return %c0_i32, %c0_i32_0 : i32, i32
  }
  func.func @transform_11(%arg0: i32) -> (i32, i32) {
    %c0_i32 = arith.constant 0 : i32
    %c0_i32_0 = arith.constant 0 : i32
    %c0_i32_1 = arith.constant 0 : i32
    return %c0_i32, %c0_i32_0 : i32, i32
  }
  func.func @transform_12(%arg0: i32) -> (i32, i32) {
    %c0_i32 = arith.constant 0 : i32
    %c0_i32_0 = arith.constant 0 : i32
    %c0_i32_1 = arith.constant 0 : i32
    return %c0_i32, %c0_i32_0 : i32, i32
  }
  func.func @transform_13(%arg0: i32) -> (i32, i32) {
    %c0_i32 = arith.constant 0 : i32
    %c0_i32_0 = arith.constant 0 : i32
    return %c0_i32, %arg0 : i32, i32
  }
}

</mosaic_0001>

<bundles_post_ra>
// kernel: contextual_popularity_forward.1
= control target key start
LH: loop header
LB: loop body
LE: loop exit
PB: predicated region body
PF: predicated region fallthrough
CT: control target
= control target key end

     0   :  { %s3188_s0 = inlined_call_operand.vmem [shape: f32[19,256], index: 0, kind: input, shape index: {}]   ;;  %s3189_s1 = inlined_call_operand.vmem [shape: f32[13,256], index: 1, kind: input, shape index: {}]   ;;  %s3190_s2 = inlined_call_operand.vmem [shape: f32[16,19], index: 2, kind: input, shape index: {}]   ;;  %s3191_s3 = inlined_call_operand.vmem [shape: f32[16,13], index: 3, kind: input, shape index: {}]   ;;  %s3192_s4 = inlined_call_operand.vmem [shape: f32[16,1], index: 4, kind: input, shape index: {}]   ;;  %s3193_s5 = inlined_call_operand.vmem [shape: f32[8,16], index: 5, kind: input, shape index: {}]   ;;  %s3194_s6 = inlined_call_operand.vmem [shape: f32[8,1], index: 6, kind: input, shape index: {}]   ;;  %s3195_s7 = inlined_call_operand.vmem [shape: f32[4,8], index: 7, kind: input, shape index: {}]   ;;  %s3196_s8 = inlined_call_operand.vmem [shape: f32[4,1], index: 8, kind: input, shape index: {}]   ;;  %s3197_s9 = inlined_call_operand.vmem [shape: f32[2,4], index: 9, kind: input, shape index: {}]   ;;  %s3198_s10 = inlined_call_operand.vmem [shape: f32[2,1], index: 10, kind: input, shape index: {}]   ;;  %s3199_s11 = inlined_call_operand.vmem [shape: f32[2,1], index: 11, kind: input, shape index: {}]   ;;  %s3200_s12 = inlined_call_operand.<no memory space> [shape: f32[1,1], index: 12, kind: input, shape index: {}]   ;;  %s3201_s13 = inlined_call_operand.hbm [shape: f32[1,256], index: 13, kind: output, shape index: {}]  }
   0x1   :  { %v18_v0 = vstv %s3200_s12 }
   0x2   :  { %19 = vst [vmem:[#allocation2] sm:$0x1] %v18_v0 }
   0x3   :  { %v60_v1 = vld [vmem:[%s3189_s1 + $0x18] sm:$0x1f]  ;;  %vm68_vm0 = vcmask 1044480   ;;  %v59_v2 = vld [vmem:[%s3189_s1 + $0x10] sm:$0x1f]  ;;  %v58_v3 = vld [vmem:[%s3189_s1 + $0x8] sm:$0xff] }
   0x4   :  { %v73_v4 = vsel %vm68_vm0, %v60_v1, 0  ;;  %v70_v5 = vsel %vm68_vm0, %v59_v2, 0  ;;  %v2870_v6 = vand.u32 4294901760, %v58_v3  ;;  %v57_v7 = vld [vmem:[%s3189_s1] sm:$0xff]  ;;  %v2784_v12 = vmov 0.0   ;;  %v56_v13 = vld [vmem:[%s3191_s3 + $0x8] sm:$0xff] }
   0x5   :  { %v55_v8 = vld [vmem:[%s3191_s3] sm:$0xff]  ;;  %v2878_v9 = vand.u32 4294901760, %v73_v4  ;;  %v2880_v10 = vand.u32 4294901760, %v70_v5  ;;  %v2882_v11 = vand.u32 4294901760, %v57_v7  ;;  %143 = vmatprep.mubr.f32.mxu0 %v2784_v12  ;;  %vm61_vm1 = vcmask 105472   ;;  %250 = vmatprep.mubr.f32.mxu1 %v2784_v12 }
   0x6   :  { %v63_v14 = vsel %vm61_vm1, %v55_v8, 0  ;;  %v2890_v15 = vsub.f32 %v58_v3, %v2870_v6  ;;  %v66_v16 = vsel %vm61_vm1, %v56_v13, 0  ;;  %vm622_vm2 = vcmask 1042432   ;;  %v54_v27 = vld [vmem:[%s3188_s0 + $0x28] sm:$0x7] }
   0x7   :  { %104 = vmatprep.subr.mxu0 %v2878_v9  ;;  %v2893_v17 = vand.u32 4294901760, %v63_v14  ;;  %v2896_v18 = vsub.f32 %v73_v4, %v2878_v9  ;;  %v2899_v19 = vsub.f32 %v70_v5, %v2880_v10  ;;  %v2902_v20 = vsub.f32 %v57_v7, %v2882_v11 }
   0x8   :  { %106 = vmatpush1.msra.mxu0 %v2880_v10  ;;  %v208_v21 = vand.u32 4294901760, %v2890_v15  ;;  %v2906_v22 = vand.u32 4294901760, %v66_v16 }
   0x9   :  { %108 = vmatprep.subr.mxu0 %v2870_v6  ;;  %v2910_v23 = vsub.f32 %v63_v14, %v2893_v17  ;;  %v196_v24 = vand.u32 4294901760, %v2896_v18  ;;  %v202_v25 = vand.u32 4294901760, %v2899_v19  ;;  %v214_v26 = vand.u32 4294901760, %v2902_v20 }
   0xa   :  { %110 = vmatpush1.msra.mxu0 %v2882_v11  ;;  %v209_v28 = vsub.f32 %v2890_v15, %v208_v21  ;;  %v2923_v29 = vsub.f32 %v66_v16, %v2906_v22 }
   0xb   :  { %v146_v30 = vand.u32 4294901760, %v2910_v23  ;;  %v197_v31 = vsub.f32 %v2896_v18, %v196_v24  ;;  %v203_v32 = vsub.f32 %v2899_v19, %v202_v25  ;;  %v215_v33 = vsub.f32 %v2902_v20, %v214_v26  ;;  %295 = vmatprep.subr.mxu0 %v2896_v18 }
   0xc   :  { %20 = vsyncpa [#allocation4], 0  ;;  %v157_v34 = vand.u32 4294901760, %v2923_v29  ;;  %v627_v35 = vsel %vm622_vm2, %v54_v27, 0  ;;  %v210_v39 = vand.u32 4294901760, %v209_v28  ;;  %v47_v44 = vld [vmem:[%s3190_s2] sm:$0xff] }
   0xd   :  { %v147_v36 = vsub.f32 %v2910_v23, %v146_v30  ;;  %v198_v37 = vand.u32 4294901760, %v197_v31  ;;  %v204_v38 = vand.u32 4294901760, %v203_v32  ;;  %v53_v40 = vld [vmem:[%s3188_s0 + $0x20] sm:$0x7]  ;;  %v216_v41 = vand.u32 4294901760, %v215_v33  ;;  %v52_v48 = vld [vmem:[%s3188_s0 + $0x18] sm:$0xff] }
   0xe   :  { %v158_v42 = vsub.f32 %v2923_v29, %v157_v34  ;;  %vm615_vm3 = vcmask 154624   ;;  %v2946_v45 = vand.u32 4294901760, %v627_v35  ;;  %v624_v46 = vsel %vm622_vm2, %v53_v40, 0  ;;  %v51_v51 = vld [vmem:[%s3188_s0 + $0x10] sm:$0xff]  ;;  %v50_v52 = vld [vmem:[%s3188_s0 + $0x8] sm:$0xff]  ;;  %v49_v56 = vld [vmem:[%s3188_s0] sm:$0xff] }
   0xf   :  { %v148_v43 = vand.u32 4294901760, %v147_v36  ;;  %199 = vmatprep.subr.mxu1 %v198_v37  ;;  %v617_v49 = vsel %vm615_vm3, %v47_v44, 0  ;;  %v2956_v50 = vand.u32 4294901760, %v624_v46  ;;  %v48_v54 = vld [vmem:[%s3190_s2 + $0x8] sm:$0xff]  ;;  %v2973_v55 = vand.u32 4294901760, %v52_v48  ;;  %v1195_v33 = vld [vmem:[%s3192_s4] sm:$0xff] }
  0x10   :  { %205 = vmatpush1.msra.mxu1 %v204_v38  ;;  %v159_v47 = vand.u32 4294901760, %v158_v42  ;;  %v2967_v53 = vsub.f32 %v627_v35, %v2946_v45  ;;  %v2978_v57 = vand.u32 4294901760, %v617_v49  ;;  %v2982_v58 = vand.u32 4294901760, %v51_v51  ;;  %v2705_v35 = vld [vmem:[#allocation2] sm:$0x1] }
  0x11   :  { %149 = vmatmul.mubr.f32.vlgmr.msra.gmra.mxu0 %v148_v43  ;;  %211 = vmatprep.subr.mxu1 %v210_v39  ;;  %v2986_v59 = vsub.f32 %v624_v46, %v2956_v50  ;;  %v2988_v60 = vand.u32 4294901760, %v50_v52  ;;  %v620_v61 = vsel %vm615_vm3, %v48_v54, 0  ;;  %v2994_v63 = vand.u32 4294901760, %v49_v56  ;;  %v1216_v36 = vld [vmem:[%s3194_s6] sm:$0xff] }
  0x12   :  { %154 = vmatprep.mubr.f32.mxu0 %v2784_v12  ;;  %217 = vmatpush1.msra.mxu1 %v216_v41  ;;  %v750_v62 = vand.u32 4294901760, %v2967_v53  ;;  %v2999_v0 = vsub.f32 %v617_v49, %v2978_v57  ;;  %v3002_v1 = vsub.f32 %v52_v48, %v2973_v55  ;;  %v3007_v2 = vsub.f32 %v51_v51, %v2982_v58  ;;  %v1720_v37 = vld [vmem:[%s3196_s8] sm:$0xf] }
  0x13   :  { %252 = vmatmul.mubr.f32.vlgmr.msra.gmra.mxu1 %v2893_v17  ;;  %298 = vmatpush1.msra.mxu0 %v2899_v19  ;;  %v3009_v3 = vand.u32 4294901760, %v620_v61  ;;  %v756_v4 = vand.u32 4294901760, %v2986_v59  ;;  %v3015_v5 = vsub.f32 %v50_v52, %v2988_v60  ;;  %v3024_v8 = vsub.f32 %v49_v56, %v2994_v63  ;;  %v2682_v38 = vld [vmem:[%s3199_s11] sm:$0x3] }
  0x14   :  { %301 = vmatprep.subr.mxu0 %v2890_v15  ;;  %257 = vmatprep.mubr.f32.mxu1 %v2784_v12  ;;  %v751_v7 = vsub.f32 %v2967_v53, %v750_v62  ;;  %v702_v13 = vand.u32 4294901760, %v2999_v0  ;;  %v762_v14 = vand.u32 4294901760, %v3002_v1  ;;  %v768_v15 = vand.u32 4294901760, %v3007_v2 }
  0x15   :  { %160 = vmatmul.mubr.f32.gmra.mxu0 %v159_v47  ;;  %383 = vmatprep.subr.mxu1 %v2878_v9  ;;  %v3035_v16 = vsub.f32 %v620_v61, %v3009_v3  ;;  %v774_v18 = vand.u32 4294901760, %v3015_v5  ;;  %v2785_v32 = vmov 0   ;;  %vm1222_vm4 = vcmask 130048  }
  0x16   :  { %304 = vmatpush1.msra.mxu0 %v2902_v20  ;;  %337 = vmatprep.mubr.f32.mxu0 %v2784_v12  ;;  %v752_v19 = vand.u32 4294901760, %v751_v7  ;;  %v780_v20 = vand.u32 4294901760, %v3024_v8  ;;  %vm1726_vm5 = vcmask 64512   ;;  %vm2204_vm6 = vcmask 31744  }
  0x17   :  { %259 = vmatmul.mubr.f32.gmra.mxu1 %v2906_v22  ;;  %472 = vmatprep.subr.mxu0 %v196_v24  ;;  %v713_v24 = vand.u32 4294901760, %v3035_v16  ;;  %vm2208_vm7 = vcmask 1043456   ;;  %vm2690_vm8 = vcmask 1041408  }
  0x18   :  { %385 = vmatpush1.msra.mxu1 %v2880_v10  ;;  %422 = vmatprep.mubr.f32.mxu1 %v2784_v12 }
  0x19   :  { %340 = vmatmul.mubr.f32.vlgmr.msra.gmra.mxu0 %v2910_v23  ;;  %387 = vmatprep.subr.mxu1 %v2870_v6  ;;  %v763_v23 = vsub.f32 %v3002_v1, %v762_v14  ;;  %v714_v28 = vsub.f32 %v3035_v16, %v713_v24 }
  0x1a   :  { %345 = vmatprep.mubr.f32.mxu0 %v2784_v12  ;;  %389 = vmatpush1.msra.mxu1 %v2882_v11 }
  0x1b   :  { %426 = vmatmul.mubr.f32.vlgmr.msra.gmra.mxu1 %v146_v30  ;;  %476 = vmatpush1.msra.mxu0 %v202_v25  ;;  %v775_v25 = vsub.f32 %v3015_v5, %v774_v18  ;;  %v764_v27 = vand.u32 4294901760, %v763_v23  ;;  %v715_v31 = vand.u32 4294901760, %v714_v28 }
  0x1c   :  { %480 = vmatprep.subr.mxu0 %v208_v21  ;;  %431 = vmatprep.mubr.f32.mxu1 %v2784_v12  ;;  %v703_v21 = vsub.f32 %v2999_v0, %v702_v13 }
  0x1d   :  { %348 = vmatmul.mubr.f32.gmra.mxu0 %v2923_v29  ;;  %561 = vmatprep.subr.mxu1 %v2878_v9  ;;  %v757_v9 = vsub.f32 %v2986_v59, %v756_v4  ;;  %v776_v29 = vand.u32 4294901760, %v775_v25 }
  0x1e   :  { %484 = vmatpush1.msra.mxu0 %v214_v26  ;;  %517 = vmatprep.mubr.f32.mxu0 %v2784_v12  ;;  %v704_v26 = vand.u32 4294901760, %v703_v21 }
  0x1f   :  { %435 = vmatmul.mubr.f32.gmra.mxu1 %v157_v34  ;;  %656 = vmatprep.subr.mxu0 %v2946_v45  ;;  %v2198_v34 = vld [vmem:[%s3198_s10] sm:$0x3] }
  0x20   :  { %563 = vmatpush1.msra.mxu1 %v2880_v10  ;;  %600 = vmatprep.mubr.f32.mxu1 %v2784_v12  ;;  %v769_v10 = vsub.f32 %v3007_v2, %v768_v15 }
  0x21   :  { %519 = vmatmul.mubr.f32.vlgmr.msra.gmra.mxu0 %v2893_v17  ;;  %565 = vmatprep.subr.mxu1 %v2870_v6  ;;  %v758_v6 = vand.u32 4294901760, %v757_v9 }
  0x22   :  { %524 = vmatprep.mubr.f32.mxu0 %v2784_v12  ;;  %567 = vmatpush1.msra.mxu1 %v2882_v11  ;;  %v781_v11 = vsub.f32 %v3024_v8, %v780_v20 }
  0x23   :  { %658 = vmatpush1.msra.mxu0 %v2956_v50  ;;  %602 = vmatmul.mubr.f32.vlgmr.msra.gmra.mxu1 %v2893_v17  ;;  %v770_v17 = vand.u32 4294901760, %v769_v10 }
  0x24   :  { %660 = vmatprep.subr.mxu0 %v2973_v55  ;;  %753 = vmatprep.subr.mxu1 %v752_v19  ;;  %v782_v30 = vand.u32 4294901760, %v781_v11 }
  0x25   :  { %526 = vmatmul.mubr.f32.gmra.mxu0 %v2906_v22  ;;  %607 = vmatprep.mubr.f32.mxu1 %v2784_v12 }
  0x26   :  { %662 = vmatpush1.msra.mxu0 %v2982_v58  ;;  %699 = vmatprep.mubr.f32.mxu0 %v2784_v12 }
  0x27   :  { %664 = vmatprep.subr.mxu0 %v2988_v60  ;;  %759 = vmatpush1.msra.mxu1 %v758_v6 }
  0x28   :  { %666 = vmatpush1.msra.mxu0 %v2994_v63  ;;  %609 = vmatmul.mubr.f32.gmra.mxu1 %v2906_v22  ;;  %v1196_v22 = vld [vmem:[%s3192_s4 + $0x8] sm:$0xff] }
  0x29   :  { %705 = vmatmul.mubr.f32.vlgmr.msra.gmra.mxu0 %v704_v26  ;;  %765 = vmatprep.subr.mxu1 %v764_v27 }
  0x2a   :  { %771 = vmatpush1.msra.mxu1 %v770_v17  ;;  %859 = vmatprep.subr.mxu0 %v2967_v53 }
  0x2b   :  { %777 = vmatprep.subr.mxu1 %v776_v29  ;;  %710 = vmatprep.mubr.f32.mxu0 %v2784_v12 }
  0x2c   :  { %783 = vmatpush1.msra.mxu1 %v782_v30  ;;  %816 = vmatprep.mubr.f32.mxu1 %v2784_v12 }
  0x2d   :  { %862 = vmatpush1.msra.mxu0 %v2986_v59  ;;  %818 = vmatmul.mubr.f32.vlgmr.msra.gmra.mxu1 %v2978_v57 }
  0x2e   :  { %716 = vmatmul.mubr.f32.gmra.mxu0 %v715_v31  ;;  %865 = vmatprep.subr.mxu0 %v3002_v1  ;;  %v1215_v31 = vld [vmem:[%s3193_s5] sm:$0xff] }
  0x2f   :  { %868 = vmatpush1.msra.mxu0 %v3007_v2  ;;  %951 = vmatprep.subr.mxu1 %v2946_v45 }
  0x30   :  { %871 = vmatprep.subr.mxu0 %v3015_v5  ;;  %823 = vmatprep.mubr.f32.mxu1 %v2784_v12 }
  0x31   :  { %874 = vmatpush1.msra.mxu0 %v3024_v8  ;;  %907 = vmatprep.mubr.f32.mxu0 %v2784_v12 }
  0x32   :  { %953 = vmatpush1.msra.mxu1 %v2956_v50  ;;  %910 = vmatmul.mubr.f32.vlgmr.msra.gmra.mxu0 %v2999_v0 }
  0x33   :  { %825 = vmatmul.mubr.f32.gmra.mxu1 %v3009_v3  ;;  %955 = vmatprep.subr.mxu1 %v2973_v55 }
  0x34   :  { %957 = vmatpush1.msra.mxu1 %v2982_v58  ;;  %1042 = vmatprep.subr.mxu0 %v750_v62 }
  0x35   :  { %959 = vmatprep.subr.mxu1 %v2988_v60  ;;  %915 = vmatprep.mubr.f32.mxu0 %v2784_v12 }
  0x36   :  { %961 = vmatpush1.msra.mxu1 %v2994_v63  ;;  %994 = vmatprep.mubr.f32.mxu1 %v2784_v12 }
  0x37   :  { %1046 = vmatpush1.msra.mxu0 %v756_v4  ;;  %998 = vmatmul.mubr.f32.vlgmr.msra.gmra.mxu1 %v702_v13 }
  0x38   :  { %918 = vmatmul.mubr.f32.gmra.mxu0 %v3035_v16  ;;  %1050 = vmatprep.subr.mxu0 %v762_v14 }
  0x39   :  { %1054 = vmatpush1.msra.mxu0 %v768_v15  ;;  %1137 = vmatprep.subr.mxu1 %v2946_v45 }
  0x3a   :  { %1058 = vmatprep.subr.mxu0 %v774_v18  ;;  %1003 = vmatprep.mubr.f32.mxu1 %v2784_v12 }
  0x3b   :  { %1062 = vmatpush1.msra.mxu0 %v780_v20  ;;  %1095 = vmatprep.mubr.f32.mxu0 %v2784_v12 }
  0x3c   :  { %1139 = vmatpush1.msra.mxu1 %v2956_v50  ;;  %1097 = vmatmul.mubr.f32.vlgmr.msra.gmra.mxu0 %v2978_v57 }
  0x3d   :  { %1007 = vmatmul.mubr.f32.gmra.mxu1 %v713_v24  ;;  %1141 = vmatprep.subr.mxu1 %v2973_v55 }
  0x3e   :  { %1143 = vmatpush1.msra.mxu1 %v2982_v58  ;;  %1102 = vmatprep.mubr.f32.mxu0 %v2784_v12 }
  0x3f   :  { %1145 = vmatprep.subr.mxu1 %v2988_v60  ;;  %1180 = vmatprep.mubr.f32.mxu1 %v2784_v12 }
  0x40   :  { %1147 = vmatpush1.msra.mxu1 %v2994_v63  ;;  %1104 = vmatmul.mubr.f32.gmra.mxu0 %v3009_v3 }
  0x41   :  { %1182 = vmatmul.mubr.f32.vlgmr.msra.gmra.mxu1 %v2978_v57  ;;  %2760 = vset.pattern.permute.xlu0 %v2785_v32 }
  0x42   :  { %1187 = vmatprep.mubr.f32.mxu1 %v2784_v12  ;;  %1204 = vperm.xlu0 %2760, %v1196_v22  }
  0x43   :  { %1294 = vmatprep.mubr.f32.mxu0 %v2784_v12  ;;  %2761 = vset.pattern.permute.xlu1 %v2785_v32 }
  0x44   :  { %1219 = vperm.xlu1 %2761, %v1216_v36  }
  0x45   :  { %1189 = vmatmul.mubr.f32.gmra.mxu1 %v3009_v3 }
  0x46   :  { %1199 = vperm.xlu0 %2760, %v1195_v33   ;;  %1390 = vmatprep.mubr.f32.mxu1 %v2784_v12 }
  0x48   :  { %1723 = vperm.xlu1 %2761, %v1720_v37   ;;  %v1224_v37 = vsel %vm1222_vm4, %v1215_v31, 0 }
  0x4a   :  { %2201 = vperm.xlu0 %2760, %v2198_v34  }
  0x4c   :  { %2685 = vperm.xlu1 %2761, %v2682_v38  }
  0x4e   :  { %2708 = vperm.xlu0 %2760, %v2705_v35  }
  0xd1   :  { %v150_v39 = vpop.f32.mrf.mxu0 }
  0xd3   :  { %v152_v40 = vpop.f32.mrf.mxu0  ;;  %v253_v41 = vpop.f32.mrf.mxu1 }
  0xd4   :  { %v254_v2 = vadd.f32 %v253_v41, %v150_v39 }
  0xd5   :  { %v161_v42 = vpop.f32.mrf.mxu0  ;;  %v255_v43 = vpop.f32.mrf.mxu1 }
  0xd6   :  { %v256_v5 = vadd.f32 %v255_v43, %v152_v40 }
  0xd7   :  { %v163_v44 = vpop.f32.mrf.mxu0  ;;  %v260_v45 = vpop.f32.mrf.mxu1 }
  0xd8   :  { %v261_v13 = vadd.f32 %v260_v45, %v161_v42  ;;  %v1205_v42 = vpop.permute.xlu0 %1204 }
  0xd9   :  { %v341_v46 = vpop.f32.mrf.mxu0  ;;  %v262_v47 = vpop.f32.mrf.mxu1 }
  0xda   :  { %v342_v7 = vadd.f32 %v341_v46, %v254_v2  ;;  %v263_v18 = vadd.f32 %v262_v47, %v163_v44 }
  0xdb   :  { %v343_v48 = vpop.f32.mrf.mxu0  ;;  %v427_v49 = vpop.f32.mrf.mxu1 }
  0xdc   :  { %v344_v14 = vadd.f32 %v343_v48, %v256_v5  ;;  %v428_v15 = vadd.f32 %v427_v49, %v342_v7 }
  0xdd   :  { %v349_v50 = vpop.f32.mrf.mxu0  ;;  %v429_v51 = vpop.f32.mrf.mxu1 }
  0xde   :  { %v350_v19 = vadd.f32 %v349_v50, %v261_v13  ;;  %v430_v20 = vadd.f32 %v429_v51, %v344_v14  ;;  %v3152_v51 = vand.u32 4294901760, %v1224_v37 }
  0xdf   :  { %v351_v52 = vpop.f32.mrf.mxu0  ;;  %v436_v53 = vpop.f32.mrf.mxu1 }
  0xe0   :  { %v352_v24 = vadd.f32 %v351_v52, %v263_v18  ;;  %v437_v6 = vadd.f32 %v436_v53, %v350_v19 }
  0xe1   :  { %v520_v54 = vpop.f32.mrf.mxu0  ;;  %v438_v55 = vpop.f32.mrf.mxu1 }
  0xe2   :  { %v521_v21 = vadd.f32 %v520_v54, %v428_v15  ;;  %v439_v27 = vadd.f32 %v438_v55, %v352_v24 }
  0xe3   :  { %v522_v56 = vpop.f32.mrf.mxu0  ;;  %v603_v57 = vpop.f32.mrf.mxu1 }
  0xe4   :  { %v523_v25 = vadd.f32 %v522_v56, %v430_v20  ;;  %v604_v11 = vadd.f32 %v603_v57, %v521_v21 }
  0xe5   :  { %v527_v58 = vpop.f32.mrf.mxu0  ;;  %v605_v59 = vpop.f32.mrf.mxu1 }
  0xe6   :  { %v528_v17 = vadd.f32 %v527_v58, %v437_v6  ;;  %v606_v28 = vadd.f32 %v605_v59, %v523_v25 }
  0xe7   :  { %v529_v60 = vpop.f32.mrf.mxu0 }
  0xe8   :  { %v610_v61 = vpop.f32.mrf.mxu1  ;;  %v530_v32 = vadd.f32 %v529_v60, %v439_v27 }
  0xe9   :  { %v706_v62 = vpop.f32.mrf.mxu0  ;;  %v611_v33 = vadd.f32 %v610_v61, %v528_v17  ;;  %v1200_v61 = vpop.permute.xlu0 %1199 }
  0xea   :  { %v612_v63 = vpop.f32.mrf.mxu1  ;;  %v707_v29 = vadd.f32 %v706_v62, %v604_v11 }
  0xeb   :  { %v708_v0 = vpop.f32.mrf.mxu0  ;;  %v613_v38 = vadd.f32 %v612_v63, %v530_v32 }
  0xec   :  { %v709_v34 = vadd.f32 %v708_v0, %v606_v28 }
  0xed   :  { %v819_v1 = vpop.f32.mrf.mxu1 }
  0xee   :  { %v717_v3 = vpop.f32.mrf.mxu0  ;;  %v820_v35 = vadd.f32 %v819_v1, %v707_v29  ;;  %v3155_v1 = vsub.f32 %v1224_v37, %v3152_v51 }
  0xef   :  { %v821_v4 = vpop.f32.mrf.mxu1  ;;  %v718_v39 = vadd.f32 %v717_v3, %v611_v33 }
  0xf0   :  { %v719_v8 = vpop.f32.mrf.mxu0  ;;  %v822_v40 = vadd.f32 %v821_v4, %v709_v34  ;;  %v1297_v20 = vand.u32 4294901760, %v3155_v1 }
  0xf1   :  { %v720_v45 = vadd.f32 %v719_v8, %v613_v38 }
  0xf2   :  { %v911_v16 = vpop.f32.mrf.mxu0  ;;  %v1298_v11 = vsub.f32 %v3155_v1, %v1297_v20 }
  0xf3   :  { %v826_v9 = vpop.f32.mrf.mxu1  ;;  %v912_v41 = vadd.f32 %v911_v16, %v820_v35 }
  0xf4   :  { %v913_v23 = vpop.f32.mrf.mxu0  ;;  %v827_v46 = vadd.f32 %v826_v9, %v718_v39  ;;  %v1299_v31 = vand.u32 4294901760, %v1298_v11 }
  0xf5   :  { %v828_v10 = vpop.f32.mrf.mxu1  ;;  %v914_v47 = vadd.f32 %v913_v23, %v822_v40 }
  0xf6   :  { %v829_v52 = vadd.f32 %v828_v10, %v720_v45  ;;  %v1220_v45 = vpop.permute.xlu1 %1219 }
  0xf7   :  { %v999_v26 = vpop.f32.mrf.mxu1 }
  0xf8   :  { %v919_v30 = vpop.f32.mrf.mxu0  ;;  %v1000_v48 = vadd.f32 %v999_v26, %v912_v41 }
  0xf9   :  { %v1001_v22 = vpop.f32.mrf.mxu1  ;;  %v920_v53 = vadd.f32 %v919_v30, %v827_v46 }
  0xfa   :  { %v921_v36 = vpop.f32.mrf.mxu0  ;;  %v1002_v54 = vadd.f32 %v1001_v22, %v914_v47 }
  0xfb   :  { %v922_v58 = vadd.f32 %v921_v36, %v829_v52 }
  0xfc   :  { %v1098_v43 = vpop.f32.mrf.mxu0 }
  0xfd   :  { %v1008_v44 = vpop.f32.mrf.mxu1  ;;  %v1099_v55 = vadd.f32 %v1098_v43, %v1000_v48 }
  0xfe   :  { %v1100_v49 = vpop.f32.mrf.mxu0  ;;  %v1009_v59 = vadd.f32 %v1008_v44, %v920_v53  ;;  %v1719_v44 = vld [vmem:[%s3195_s7] sm:$0xf] }
  0xff   :  { %v1010_v50 = vpop.f32.mrf.mxu1  ;;  %v1101_v60 = vadd.f32 %v1100_v49, %v1002_v54  ;;  %v1728_v48 = vsel %vm1726_vm5, %v1719_v44, 0 }
 0x100   :  { %v1105_v56 = vpop.f32.mrf.mxu0  ;;  %v1011_v2 = vadd.f32 %v1010_v50, %v922_v58  ;;  %v1797_v50 = vand.u32 4294901760, %v1728_v48 }
 0x101   :  { %v1183_v57 = vpop.f32.mrf.mxu1  ;;  %v1106_v3 = vadd.f32 %v1105_v56, %v1009_v59 }
 0x102   :  { %v1184_v62 = vadd.f32 %v1183_v57, %v1099_v55  ;;  %v1107_v63 = vpop.f32.mrf.mxu0  ;;  %v1798_v57 = vsub.f32 %v1728_v48, %v1797_v50 }
 0x103   :  { %v1185_v0 = vpop.f32.mrf.mxu1  ;;  %v1108_v13 = vadd.f32 %v1107_v63, %v1011_v2 }
 0x104   :  { %v1207_v4 = vadd.f32 %v1200_v61, %v1184_v62  ;;  %v1186_v5 = vadd.f32 %v1185_v0, %v1101_v60 }
 0x105   :  { %v1190_v7 = vpop.f32.mrf.mxu1 }
 0x106   :  { %v1211_v8 = vmax.f32 %v1207_v4, 0.0  ;;  %v1208_v14 = vadd.f32 %v1200_v61, %v1186_v5  ;;  %v1191_v15 = vadd.f32 %v1190_v7, %v1106_v3 }
 0x107   :  { %v1192_v16 = vpop.f32.mrf.mxu1 }
 0x108   :  { %v1212_v9 = vmax.f32 %v1208_v14, 0.0  ;;  %v1209_v18 = vadd.f32 %v1205_v42, %v1191_v15  ;;  %v1193_v19 = vadd.f32 %v1192_v16, %v1108_v13  ;;  %v1260_v21 = vand.u32 4294901760, %v1211_v8 }
 0x10a   :  { %v1258_v23 = vand.u32 4294901760, %v1212_v9  ;;  %v1213_v10 = vmax.f32 %v1209_v18, 0.0  ;;  %v1210_v24 = vadd.f32 %v1205_v42, %v1193_v19  ;;  %v1353_v27 = vsub.f32 %v1211_v8, %v1260_v21 }
 0x10c   :  { %v1256_v6 = vand.u32 4294901760, %v1213_v10  ;;  %v1214_v25 = vmax.f32 %v1210_v24, 0.0  ;;  %v1347_v26 = vsub.f32 %v1212_v9, %v1258_v23  ;;  %v1354_v32 = vand.u32 4294901760, %v1353_v27 }
 0x10e   :  { %v1341_v17 = vsub.f32 %v1213_v10, %v1256_v6  ;;  %v1254_v28 = vand.u32 4294901760, %v1214_v25  ;;  %v1348_v22 = vand.u32 4294901760, %v1347_v26  ;;  %v1355_v37 = vsub.f32 %v1353_v27, %v1354_v32 }
 0x110   :  { %v1342_v29 = vand.u32 4294901760, %v1341_v17  ;;  %1255 = vmatprep.subr.mxu0 %v1254_v28  ;;  %v1335_v30 = vsub.f32 %v1214_v25, %v1254_v28  ;;  %v1349_v36 = vsub.f32 %v1347_v26, %v1348_v22  ;;  %v1356_v41 = vand.u32 4294901760, %v1355_v37 }
 0x111   :  { %1257 = vmatpush1.msra.mxu0 %v1256_v6 }
 0x112   :  { %1259 = vmatprep.subr.mxu0 %v1258_v23  ;;  %v1336_v33 = vand.u32 4294901760, %v1335_v30  ;;  %v1343_v34 = vsub.f32 %v1341_v17, %v1342_v29  ;;  %v1350_v40 = vand.u32 4294901760, %v1349_v36 }
 0x113   :  { %1261 = vmatpush1.msra.mxu0 %v1260_v21 }
 0x114   :  { %1428 = vmatprep.subr.mxu0 %v1335_v30  ;;  %1300 = vmatmul.mubr.f32.vlgmr.msra.gmra.mxu0 %v1299_v31  ;;  %v1337_v35 = vsub.f32 %v1335_v30, %v1336_v33  ;;  %v1344_v39 = vand.u32 4294901760, %v1343_v34 }
 0x115   :  { %1431 = vmatpush1.msra.mxu0 %v1341_v17  ;;  %1470 = vmatprep.mubr.f32.mxu0 %v2784_v12 }
 0x116   :  { %1434 = vmatprep.subr.mxu0 %v1347_v26  ;;  %v1338_v38 = vand.u32 4294901760, %v1337_v35 }
 0x117   :  { %1437 = vmatpush1.msra.mxu0 %v1353_v27  ;;  %v2197_v27 = vld [vmem:[%s3197_s9] sm:$0x3]  ;;  %s2787_s9 = smov [#allocation3]  }
 0x118   :  { %1339 = vmatprep.subr.mxu1 %v1338_v38  ;;  %1588 = vmatprep.subr.mxu0 %v1336_v33  ;;  %s2748_s24 = sshll.u32 %s2787_s9, 4  ;;  %s2749_s24 = int_to_ptr.vmem [resolvable:$true] %s2748_s24 }
 0x119   :  { %1345 = vmatpush1.msra.mxu1 %v1344_v39  ;;  %1473 = vmatmul.mubr.f32.vlgmr.msra.gmra.mxu0 %v3155_v1  ;;  %v1799_v1 = vand.u32 4294901760, %v1798_v57  ;;  %s2762_s25 = scalar_lea.vmem %s2749_s24, 32  ;;  %p2767_p1 = scmp.lt.s32.totalorder %s2749_s24, %s2749_s24 }
 0x11a   :  { %1592 = vmatpush1.msra.mxu0 %v1342_v29  ;;  %1351 = vmatprep.subr.mxu1 %v1350_v40  ;;  %v1724_v29 = vpop.permute.xlu1 %1723  ;;  %p2763_p0 = scmp.ne.s32.totalorder %s2749_s24, %s2762_s25  ;;  %p2768_p2 = scmp.lt.s32.totalorder %s2762_s25, %s2762_s25 }
 0x11b   :  { %1596 = vmatprep.subr.mxu0 %v1348_v22  ;;  %1357 = vmatpush1.msra.mxu1 %v1356_v41  ;;  %v1800_v14 = vsub.f32 %v1798_v57, %v1799_v1 }
 0x11c   :  { %1600 = vmatpush1.msra.mxu0 %v1354_v32  ;;  %1392 = vmatmul.mubr.f32.vlgmr.msra.gmra.mxu1 %v3152_v51  ;;  %p2769_p3 = por %p2768_p2, %p2767_p1 }
 0x11d   :  { %1508 = vmatprep.subr.mxu1 %v1254_v28  ;;  %1547 = vmatprep.mubr.f32.mxu1 %v2784_v12  ;;  %v1801_v19 = vand.u32 4294901760, %v1800_v14 }
 0x11e   :  { %1510 = vmatpush1.msra.mxu1 %v1256_v6  ;;  %1633 = vmatprep.mubr.f32.mxu0 %v2784_v12  ;;  %p2770_p4 = pnand %p2769_p3, %p2763_p0 }
 0x11f   :  { %1512 = vmatprep.subr.mxu1 %v1258_v23  ;;  %1635 = vmatmul.mubr.f32.vlgmr.msra.gmra.mxu0 %v3152_v51 }
 0x120   :  { %1514 = vmatpush1.msra.mxu1 %v1260_v21  ;;  %1796 = vmatprep.mubr.f32.mxu0 %v2784_v12 }
 0x121   :  { %1551 = vmatmul.mubr.f32.vlgmr.msra.gmra.mxu1 %v1297_v20  ;;  %1670 = vmatprep.subr.mxu1 %v1254_v28  ;;  %v2206_v28 = vsel %vm2204_vm6, %v2197_v27, 0 }
 0x122   :  { %1672 = vmatpush1.msra.mxu1 %v1256_v6  ;;  %1709 = vmatprep.mubr.f32.mxu1 %v2784_v12  ;;  %v2282_v32 = vand.u32 4294901760, %v2206_v28 }
 0x123   :  { %1674 = vmatprep.subr.mxu1 %v1258_v23 }
 0x124   :  { %1676 = vmatpush1.msra.mxu1 %v1260_v21  ;;  %v2283_v40 = vsub.f32 %v2206_v28, %v2282_v32 }
 0x125   :  { %1711 = vmatmul.mubr.f32.vlgmr.msra.gmra.mxu1 %v3152_v51 }
 0x126   :  { %1882 = vmatprep.mubr.f32.mxu1 %v2784_v12  ;;  %v2284_v48 = vand.u32 4294901760, %v2283_v40 }
 0x1d4   :  { %v1301_v42 = vpop.f32.mrf.mxu0 }
 0x1d5   :  { %v1302_v46 = vadd.f32 %v1301_v42, %v1220_v45 }
 0x1d6   :  { %v1303_v43 = vpop.f32.mrf.mxu0 }
 0x1d7   :  { %v1304_v52 = vadd.f32 %v1303_v43, %v1220_v45 }
 0x1d9   :  { %v1474_v47 = vpop.f32.mrf.mxu0 }
 0x1db   :  { %v1476_v54 = vpop.f32.mrf.mxu0 }
 0x1dc   :  { %v1393_v49 = vpop.f32.mrf.mxu1 }
 0x1dd   :  { %v1394_v53 = vadd.f32 %v1393_v49, %v1302_v46 }
 0x1de   :  { %v1395_v55 = vpop.f32.mrf.mxu1 }
 0x1df   :  { %v1396_v51 = vadd.f32 %v1395_v55, %v1304_v52  ;;  %v1475_v56 = vadd.f32 %v1474_v47, %v1394_v53  ;;  %v1636_v60 = vpop.f32.mrf.mxu0  ;;  %v2285_v55 = vsub.f32 %v2283_v40, %v2284_v48 }
 0x1e1   :  { %v1477_v58 = vadd.f32 %v1476_v54, %v1396_v51  ;;  %v1552_v59 = vpop.f32.mrf.mxu1  ;;  %v1638_v2 = vpop.f32.mrf.mxu0 }
 0x1e2   :  { %v1553_v61 = vadd.f32 %v1552_v59, %v1475_v56 }
 0x1e3   :  { %v1554_v62 = vpop.f32.mrf.mxu1 }
 0x1e4   :  { %v1555_v63 = vadd.f32 %v1554_v62, %v1477_v58  ;;  %v1637_v0 = vadd.f32 %v1636_v60, %v1553_v61  ;;  %v2286_v61 = vand.u32 4294901760, %v2285_v55 }
 0x1e5   :  { %v1712_v3 = vpop.f32.mrf.mxu1 }
 0x1e6   :  { %v1639_v4 = vadd.f32 %v1638_v2, %v1555_v63  ;;  %v1713_v5 = vadd.f32 %v1712_v3, %v1637_v0 }
 0x1e7   :  { %v1714_v7 = vpop.f32.mrf.mxu1 }
 0x1e8   :  { %v1717_v8 = vmax.f32 %v1713_v5, 0.0  ;;  %v1715_v13 = vadd.f32 %v1714_v7, %v1639_v4 }
 0x1ea   :  { %v1762_v15 = vand.u32 4294901760, %v1717_v8  ;;  %v1718_v16 = vmax.f32 %v1715_v13, 0.0  ;;  %v2202_v13 = vpop.permute.xlu0 %2201 }
 0x1ec   :  { %v1845_v9 = vsub.f32 %v1717_v8, %v1762_v15  ;;  %v1760_v18 = vand.u32 4294901760, %v1718_v16 }
 0x1ee   :  { %v1846_v20 = vand.u32 4294901760, %v1845_v9  ;;  %v1839_v21 = vsub.f32 %v1718_v16, %v1760_v18  ;;  %1761 = vmatprep.subr.mxu0 %v1760_v18 }
 0x1ef   :  { %1763 = vmatpush1.msra.mxu0 %v1762_v15 }
 0x1f0   :  { %1802 = vmatmul.mubr.f32.vlgmr.msra.gmra.mxu0 %v1801_v19  ;;  %1922 = vmatprep.subr.mxu0 %v1839_v21  ;;  %v1840_v23 = vand.u32 4294901760, %v1839_v21  ;;  %v1847_v10 = vsub.f32 %v1845_v9, %v1846_v20 }
 0x1f1   :  { %1925 = vmatpush1.msra.mxu0 %v1845_v9  ;;  %1958 = vmatprep.mubr.f32.mxu0 %v2784_v12 }
 0x1f2   :  { %2076 = vmatprep.subr.mxu0 %v1840_v23  ;;  %v1841_v24 = vsub.f32 %v1839_v21, %v1840_v23  ;;  %v1848_v25 = vand.u32 4294901760, %v1847_v10 }
 0x1f4   :  { %1961 = vmatmul.mubr.f32.vlgmr.msra.gmra.mxu0 %v1798_v57  ;;  %v1842_v6 = vand.u32 4294901760, %v1841_v24 }
 0x1f5   :  { %2080 = vmatpush1.msra.mxu0 %v1846_v20  ;;  %2113 = vmatprep.mubr.f32.mxu0 %v2784_v12 }
 0x1f6   :  { %1843 = vmatprep.subr.mxu1 %v1842_v6 }
 0x1f7   :  { %1849 = vmatpush1.msra.mxu1 %v1848_v25 }
 0x1f8   :  { %1884 = vmatmul.mubr.f32.vlgmr.msra.gmra.mxu1 %v1797_v50  ;;  %1998 = vmatprep.subr.mxu1 %v1760_v18 }
 0x1f9   :  { %2000 = vmatpush1.msra.mxu1 %v1762_v15  ;;  %2033 = vmatprep.mubr.f32.mxu1 %v2784_v12 }
 0x1fa   :  { %2152 = vmatprep.subr.mxu1 %v1760_v18  ;;  %2115 = vmatmul.mubr.f32.vlgmr.msra.gmra.mxu0 %v1797_v50 }
 0x1fb   :  { %2281 = vmatprep.mubr.f32.mxu0 %v2784_v12 }
 0x1fc   :  { %2037 = vmatmul.mubr.f32.vlgmr.msra.gmra.mxu1 %v1799_v1 }
 0x1fd   :  { %2154 = vmatpush1.msra.mxu1 %v1762_v15  ;;  %2187 = vmatprep.mubr.f32.mxu1 %v2784_v12 }
 0x200   :  { %2189 = vmatmul.mubr.f32.vlgmr.msra.gmra.mxu1 %v1797_v50 }
 0x201   :  { %2367 = vmatprep.mubr.f32.mxu1 %v2784_v12 }
 0x2b0   :  { %v1803_v11 = vpop.f32.mrf.mxu0 }
 0x2b1   :  { %v1804_v30 = vadd.f32 %v1803_v11, %v1724_v29 }
 0x2b2   :  { %v1805_v26 = vpop.f32.mrf.mxu0 }
 0x2b3   :  { %v1806_v33 = vadd.f32 %v1805_v26, %v1724_v29 }
 0x2b4   :  { %v1962_v17 = vpop.f32.mrf.mxu0 }
 0x2b6   :  { %v1964_v22 = vpop.f32.mrf.mxu0 }
 0x2b8   :  { %v1885_v31 = vpop.f32.mrf.mxu1 }
 0x2b9   :  { %v1886_v34 = vadd.f32 %v1885_v31, %v1804_v30 }
 0x2ba   :  { %v1887_v35 = vpop.f32.mrf.mxu1  ;;  %v2116_v39 = vpop.f32.mrf.mxu0 }
 0x2bb   :  { %v1888_v36 = vadd.f32 %v1887_v35, %v1806_v33  ;;  %v1963_v37 = vadd.f32 %v1962_v17, %v1886_v34  ;;  %v2711_v34 = vlaneseq }
 0x2bc   :  { %v2038_v38 = vpop.f32.mrf.mxu1  ;;  %v2118_v46 = vpop.f32.mrf.mxu0 }
 0x2bd   :  { %v1965_v41 = vadd.f32 %v1964_v22, %v1888_v36  ;;  %v2039_v42 = vadd.f32 %v2038_v38, %v1963_v37  ;;  %v2686_v22 = vpop.permute.xlu1 %2685  ;;  %vm2739_vm9 = vcmp.lt.s32.totalorder %v2711_v34, 256 }
 0x2be   :  { %v2040_v43 = vpop.f32.mrf.mxu1 }
 0x2bf   :  { %v2041_v44 = vadd.f32 %v2040_v43, %v1965_v41  ;;  %v2117_v45 = vadd.f32 %v2116_v39, %v2039_v42  ;;  %v2712_v39 = vshrl.u32 %v2711_v34, 7 }
 0x2c0   :  { %v2190_v47 = vpop.f32.mrf.mxu1 }
 0x2c1   :  { %v2119_v49 = vadd.f32 %v2118_v46, %v2041_v44  ;;  %v2191_v50 = vadd.f32 %v2190_v47, %v2117_v45  ;;  %v2713_v44 = vsub.s32 0, %v2712_v39  ;;  %v2709_v47 = vpop.permute.xlu0 %2708 }
 0x2c2   :  { %v2192_v52 = vpop.f32.mrf.mxu1 }
 0x2c3   :  { %v2195_v53 = vmax.f32 %v2191_v50, 0.0  ;;  %v2193_v54 = vadd.f32 %v2192_v52, %v2119_v49  ;;  %v2786_v50 = vmov 1966171168  }
 0x2c4   :  { %v2723_v52 = vunpack.c.l.s4 %v2786_v50 }
 0x2c5   :  { %v2210_v51 = vsel %vm2208_vm7, %v2195_v53, 0  ;;  %v2196_v56 = vmax.f32 %v2193_v54, 0.0  ;;  %v2714_v53 = vrot.slane %v2709_v47, %v2713_v44 }
 0x2c6   :  { %v2247_v57 = vand.u32 4294901760, %v2210_v51 }
 0x2c7   :  { %v2213_v58 = vsel %vm2208_vm7, %v2196_v56, 0 }
 0x2c8   :  { %v2330_v59 = vsub.f32 %v2210_v51, %v2247_v57  ;;  %v2245_v60 = vand.u32 4294901760, %v2213_v58 }
 0x2ca   :  { %2246 = vmatprep.subr.mxu0 %v2245_v60  ;;  %v2324_v62 = vsub.f32 %v2213_v58, %v2245_v60  ;;  %v2331_v63 = vand.u32 4294901760, %v2330_v59 }
 0x2cb   :  { %2248 = vmatpush1.msra.mxu0 %v2247_v57 }
 0x2cc   :  { %2287 = vmatmul.mubr.f32.vlgmr.msra.gmra.mxu0 %v2286_v61  ;;  %2407 = vmatprep.subr.mxu0 %v2324_v62  ;;  %v2325_v0 = vand.u32 4294901760, %v2324_v62  ;;  %v2332_v1 = vsub.f32 %v2330_v59, %v2331_v63 }
 0x2cd   :  { %2410 = vmatpush1.msra.mxu0 %v2330_v59  ;;  %2443 = vmatprep.mubr.f32.mxu0 %v2784_v12 }
 0x2ce   :  { %2561 = vmatprep.subr.mxu0 %v2325_v0  ;;  %v2326_v2 = vsub.f32 %v2324_v62, %v2325_v0  ;;  %v2333_v4 = vand.u32 4294901760, %v2332_v1 }
 0x2d0   :  { %2446 = vmatmul.mubr.f32.vlgmr.msra.gmra.mxu0 %v2283_v40  ;;  %v2327_v3 = vand.u32 4294901760, %v2326_v2 }
 0x2d1   :  { %2565 = vmatpush1.msra.mxu0 %v2331_v63  ;;  %2598 = vmatprep.mubr.f32.mxu0 %v2784_v12 }
 0x2d2   :  { %2328 = vmatprep.subr.mxu1 %v2327_v3 }
 0x2d3   :  { %2334 = vmatpush1.msra.mxu1 %v2333_v4 }
 0x2d4   :  { %2369 = vmatmul.mubr.f32.vlgmr.msra.gmra.mxu1 %v2282_v32  ;;  %2483 = vmatprep.subr.mxu1 %v2245_v60 }
 0x2d5   :  { %2485 = vmatpush1.msra.mxu1 %v2247_v57  ;;  %2518 = vmatprep.mubr.f32.mxu1 %v2784_v12 }
 0x2d6   :  { %2637 = vmatprep.subr.mxu1 %v2245_v60  ;;  %2600 = vmatmul.mubr.f32.vlgmr.msra.gmra.mxu0 %v2282_v32 }
 0x2d8   :  { %2522 = vmatmul.mubr.f32.vlgmr.msra.gmra.mxu1 %v2284_v48 }
 0x2d9   :  { %2639 = vmatpush1.msra.mxu1 %v2247_v57  ;;  %2672 = vmatprep.mubr.f32.mxu1 %v2784_v12  ;;  %v2724_v57 = vunpack.c.0.s8 %v2723_v52 }
 0x2db   :  { %v2727_v61 = vsub.s32 %v2724_v57, %v2712_v39 }
 0x2dc   :  { %2674 = vmatmul.mubr.f32.vlgmr.msra.gmra.mxu1 %v2282_v32 }
 0x38c   :  { %v2288_v5 = vpop.f32.mrf.mxu0 }
 0x38d   :  { %v2289_v14 = vadd.f32 %v2288_v5, %v2202_v13 }
 0x38e   :  { %v2290_v7 = vpop.f32.mrf.mxu0 }
 0x38f   :  { %v2291_v9 = vadd.f32 %v2290_v7, %v2202_v13 }
 0x390   :  { %v2447_v8 = vpop.f32.mrf.mxu0 }
 0x392   :  { %v2449_v16 = vpop.f32.mrf.mxu0 }
 0x394   :  { %v2370_v15 = vpop.f32.mrf.mxu1 }
 0x395   :  { %v2371_v18 = vadd.f32 %v2370_v15, %v2289_v14 }
 0x396   :  { %v2372_v19 = vpop.f32.mrf.mxu1  ;;  %v2601_v10 = vpop.f32.mrf.mxu0 }
 0x397   :  { %v2373_v20 = vadd.f32 %v2372_v19, %v2291_v9  ;;  %v2448_v21 = vadd.f32 %v2447_v8, %v2371_v18 }
 0x398   :  { %v2523_v23 = vpop.f32.mrf.mxu1  ;;  %v2603_v26 = vpop.f32.mrf.mxu0 }
 0x399   :  { %v2450_v24 = vadd.f32 %v2449_v16, %v2373_v20  ;;  %v2524_v6 = vadd.f32 %v2523_v23, %v2448_v21 }
 0x39a   :  { %v2525_v25 = vpop.f32.mrf.mxu1 }
 0x39b   :  { %v2526_v11 = vadd.f32 %v2525_v25, %v2450_v24  ;;  %v2602_v12 = vadd.f32 %v2601_v10, %v2524_v6 }
 0x39c   :  { %v2675_v27 = vpop.f32.mrf.mxu1 }
 0x39d   :  { %v2604_v17 = vadd.f32 %v2603_v26, %v2526_v11  ;;  %v2676_v28 = vadd.f32 %v2675_v27, %v2602_v12 }
 0x39e   :  { %v2677_v29 = vpop.f32.mrf.mxu1 }
 0x39f   :  { %v2680_v30 = vmax.f32 %v2676_v28, 0.0  ;;  %v2678_v31 = vadd.f32 %v2677_v29, %v2604_v17 }
 0x3a1   :  { %v2688_v32 = vmul.f32 %v2686_v22, %v2680_v30  ;;  %v2681_v33 = vmax.f32 %v2678_v31, 0.0 }
 0x3a3   :  { %v2691_v35 = vsel %vm2690_vm8, %v2688_v32, 0.0  ;;  %v2689_v36 = vmul.f32 %v2686_v22, %v2681_v33 }
 0x3a4   :  { %v2692_v37 = vrot.slane %v2691_v35, 4 }
 0x3a5   :  { %v2698_v38 = vsel %vm2690_vm8, %v2689_v36, 0.0 }
 0x3a6   :  { %v2693_v40 = vadd.f32 %v2692_v37, %v2691_v35  ;;  %v2699_v41 = vrot.slane %v2698_v38, 4 }
 0x3a8   :  { %v2694_v42 = vrot.slane %v2693_v40, 2  ;;  %v2700_v43 = vadd.f32 %v2699_v41, %v2698_v38 }
 0x3aa   :  { %v2695_v45 = vadd.f32 %v2694_v42, %v2693_v40  ;;  %v2701_v46 = vrot.slane %v2700_v43, 2 }
 0x3ac   :  { %v2696_v48 = vrot.slane %v2695_v45, 1  ;;  %v2702_v49 = vadd.f32 %v2701_v46, %v2700_v43 }
 0x3ae   :  { %v2697_v54 = vadd.f32 %v2696_v48, %v2695_v45  ;;  %v2703_v55 = vrot.slane %v2702_v49, 1 }
 0x3b0   :  { %v2704_v51 = vadd.f32 %v2703_v55, %v2702_v49  ;;  %v2715_v56 = vadd.f32 %v2714_v53, %v2697_v54 }
 0x3b2   :  { %v2716_v58 = vadd.f32 %v2714_v53, %v2704_v51  ;;  %v2717_v59 = vmax.f32 %v2715_v56, 0.0 }
 0x3b4   :  { %v2718_v60 = vmax.f32 %v2716_v58, 0.0 }
 0x3b6   :  { %v2721_v62 = vcombine.low %v2717_v59, %v2718_v60 }
 0x3b8   :  { %v2728_v63 = vrot.slane %v2721_v62, %v2727_v61 }
 0x3ba   :  { %v2735_v0 = vrot.slane %v2728_v63, %v2727_v61 }
 0x3bc   :  { %2741 = vst.msk [vmem:[#allocation3] sm:$0x3] %vm2739_vm9, %v2735_v0 }
 0x3bd   :  { %2773 = shalt.err (!%p2770_p4)
}
 0x3be   :  { %2751 = dma.vmem_to_hbm [thread:$0]  %s2749_s24, 32, %s3201_s13, [#allocation4]  }
 0x3bf   :  { %2782 = dma.done.wait [#allocation4], 32  }
 0x3c0   :  { %2783 = vsyncadd [#allocation4], 4294967264 }
 0x3c1   :  { %2755 = vsyncpa [#allocation4], 1 }

</bundles_post_ra>
